<compile_context>
chip_gen: v7x
topology: tpu7x:2x2x1
jax: 0.10.0
libtpu: 0.0.40
codegen_flags: <defaults>
</compile_context>

<pallas_src>
import functools

import jax
import jax.numpy as jnp
from jax.experimental import pallas as pl
from jax.experimental.pallas import tpu as pltpu


def _block_kernel(x_ref, w123_ref, w4_ref, bias_ref, mask_ref, o_ref,
                  *, Cin, Cm, Cout, W):
    """One lane block (whole images). Activations are (C, L): C on sublanes,
    flattened (batch, H, W) pixels on lanes."""
    L = x_ref.shape[1]

    # in-kernel f32 -> bf16 cast (VPU filler; avoids a wrapper-side HBM pass)
    x = x_ref[...].astype(jnp.bfloat16)                     # (Cin, L)

    # static slices of the packed operand slabs
    w1t = w123_ref[:, 0:Cin]                                # (Cm, Cin)   bf16
    w2t = w123_ref[:, Cin:Cin + 3 * Cm]                     # (Cm, 3Cm)   bf16
    w3t = w123_ref[:, Cin + 3 * Cm:Cin + 6 * Cm]            # (Cm, 3Cm)   bf16
    b1 = bias_ref[0:Cm]                                     # (Cm, 1)     f32
    b2 = bias_ref[Cm:2 * Cm]
    b3 = bias_ref[2 * Cm:3 * Cm]
    b4 = bias_ref[3 * Cm:3 * Cm + Cout]                     # (Cout, 1)   f32
    m_up = mask_ref[0:1]                                    # (1, L) 0/1  f32
    m_dn = mask_ref[1:2]
    m_lf = mask_ref[2:3]
    m_rt = mask_ref[3:4]

    # --- conv1: 1x1 + ReLU ---------------------------------------------------
    z = jnp.dot(w1t, x, preferred_element_type=jnp.float32) + b1
    y = jnp.maximum(z, 0.0)                                 # (Cm, L) f32

    # --- conv2: (3,1), pad (1,0)  (conv over H) + ReLU ------------------------
    # taps h-1 / h / h+1 == lane shifts of +-W; circular wrap (image top/bottom
    # and cross-image leakage) is zeroed by the precomputed boundary masks.
    up = m_up * pltpu.roll(y, W, axis=1)                    # y[h-1]
    dn = m_dn * pltpu.roll(y, L - W, axis=1)                # y[h+1]
    taps = jnp.concatenate([up, y, dn], axis=0).astype(jnp.bfloat16)   # (3Cm, L)
    z = jnp.dot(w2t, taps, preferred_element_type=jnp.float32) + b2
    y = jnp.maximum(z, 0.0)                                 # (Cm, L) f32

    # --- conv3: (1,3), pad (0,1)  (conv over W) + ReLU ------------------------
    lf = m_lf * pltpu.roll(y, 1, axis=1)                    # y[w-1]
    rt = m_rt * pltpu.roll(y, L - 1, axis=1)                # y[w+1]
    taps = jnp.concatenate([lf, y, rt], axis=0).astype(jnp.bfloat16)   # (3Cm, L)
    z = jnp.dot(w3t, taps, preferred_element_type=jnp.float32) + b3
    y = jnp.maximum(z, 0.0).astype(jnp.bfloat16)            # (Cm, L)

    # --- conv4: 1x1 (no activation) -------------------------------------------
    out = jnp.dot(w4_ref[...], y, preferred_element_type=jnp.float32) + b4
    o_ref[...] = out.astype(o_ref.dtype)                    # lane-dense store


def _default_lane_splits(B):
    """Use 2 parallel lane blocks only when 2 TensorCores/chip are likely (v7x);
    on single-TC chips (v5e/v6e) an extra grid step is pure overhead."""
    try:
        kind = jax.devices()[0].device_kind.lower()
    except Exception:
        return 1
    if "v7" in kind and B % 2 == 0:
        return 2
    return 1


def small_basic_block_pallas(x_nchw, params, lane_splits=None):
    """x_nchw: (B, Cin, H, W) float32. Returns (B, Cout, H, W) float32."""
    w1, b1, w2, b2, w3, b3, w4, b4 = params
    B, Cin, H, W = x_nchw.shape
    Cm = w1.shape[1]
    Cout = w4.shape[1]
    HW = H * W
    lanes_total = B * HW

    if lane_splits is None:
        lane_splits = _default_lane_splits(B)
    assert B % lane_splits == 0, "lane blocks must contain whole images"
    L = (B // lane_splits) * HW                     # lanes per grid step

    # ---- layout plumbing (wrapper side, trace-time / tiny XLA work) ----------
    # Fold batch into the lane axis: (B, Cin, H, W) -> (Cin, B*H*W), keep f32.
    x_flat = jnp.transpose(x_nchw, (1, 0, 2, 3)).reshape(Cin, lanes_total)

    # Weights pre-transposed for the (C, lanes) layout; 3-tap convs pre-stacked
    # along K; w1|w2|w3 packed into one bf16 slab (static lane slices in-kernel).
    w1t = jnp.transpose(w1, (1, 0)).astype(jnp.bfloat16)                    # (Cm, Cin)
    w2t = jnp.transpose(w2.reshape(3 * Cm, Cm), (1, 0)).astype(jnp.bfloat16)  # (Cm, 3Cm)
    w3t = jnp.transpose(w3.reshape(3 * Cm, Cm), (1, 0)).astype(jnp.bfloat16)  # (Cm, 3Cm)
    w123 = jnp.concatenate([w1t, w2t, w3t], axis=1)                         # (Cm, Cin+6Cm)
    w4t = jnp.transpose(w4, (1, 0)).astype(jnp.bfloat16)                    # (Cout, Cm)
    biases = jnp.concatenate(
        [b1.reshape(-1), b2.reshape(-1), b3.reshape(-1), b4.reshape(-1)]
    ).reshape(3 * Cm + Cout, 1).astype(jnp.float32)                         # (3Cm+Cout, 1)

    # Precomputed 0/1 boundary masks over one lane block (lane -> (h, w) pos);
    # no integer mod/div in the kernel, and they also kill cross-image leakage.
    l_idx = jnp.arange(L)
    r = l_idx % HW
    hpos = r // W
    wpos = r % W
    masks = jnp.stack([
        (hpos >= 1), (hpos <= H - 2), (wpos >= 1), (wpos <= W - 2),
    ]).astype(jnp.float32)                                                   # (4, L)

    flops = 2 * lanes_total * (Cin * Cm + 3 * Cm * Cm + 3 * Cm * Cm + Cm * Cout)
    bytes_accessed = (
        x_flat.size * 4                       # f32 input (cast happens in-kernel)
        + (w123.size + w4t.size) * 2          # bf16 weights
        + biases.size * 4 + masks.size * 4    # f32 biases + masks
        + Cout * lanes_total * 4)             # f32 output

    full = lambda a: pl.BlockSpec(a.shape, lambda i: (0,) * a.ndim)

    out_flat = pl.pallas_call(
        functools.partial(_block_kernel, Cin=Cin, Cm=Cm, Cout=Cout, W=W),
        out_shape=jax.ShapeDtypeStruct((Cout, lanes_total), jnp.float32),
        grid=(lane_splits,),
        in_specs=[
            pl.BlockSpec((Cin, L), lambda i: (0, i)),
            full(w123), full(w4t), full(biases), full(masks),
        ],
        out_specs=pl.BlockSpec((Cout, L), lambda i: (0, i)),
        compiler_params=pltpu.CompilerParams(
            dimension_semantics=("parallel",)),
        cost_estimate=pl.CostEstimate(
            flops=flops, transcendentals=0, bytes_accessed=bytes_accessed),
    )(x_flat, w123, w4t, biases, masks)

    # (Cout, B*HW) -> (B, Cout, H, W)
    return jnp.transpose(out_flat.reshape(Cout, B, H, W), (1, 0, 2, 3))


def init_params(key, ch_in, ch_out):
    """Deterministic synthetic parameters (kernel-friendly storage):
      w1: (Cin, Cm)     b1: (1, Cm)
      w2: (3, Cm, Cm)   b2: (1, Cm)   (w2[kh, cin, cout], kh=0 -> tap h-1)
      w3: (3, Cm, Cm)   b3: (1, Cm)   (w3[kw, cin, cout], kw=0 -> tap w-1)
      w4: (Cm, Cout)    b4: (1, Cout)
    """
    cm = ch_out // 4
    ks = jax.random.split(key, 8)
    s = 0.1
    w1 = s * jax.random.normal(ks[0], (ch_in, cm), jnp.float32)
    b1 = s * jax.random.normal(ks[1], (1, cm), jnp.float32)
    w2 = s * jax.random.normal(ks[2], (3, cm, cm), jnp.float32)
    b2 = s * jax.random.normal(ks[3], (1, cm), jnp.float32)
    w3 = s * jax.random.normal(ks[4], (3, cm, cm), jnp.float32)
    b3 = s * jax.random.normal(ks[5], (1, cm), jnp.float32)
    w4 = s * jax.random.normal(ks[6], (cm, ch_out), jnp.float32)
    b4 = s * jax.random.normal(ks[7], (1, ch_out), jnp.float32)
    return (w1, b1, w2, b2, w3, b3, w4, b4)


def reference_lax(x_nchw, params):
    """Pure-JAX f32 reference using lax.conv, NCHW, matching nn.Conv2d semantics."""
    w1, b1, w2, b2, w3, b3, w4, b4 = params

    def conv(x, w_oihw, b, pad):
        y = jax.lax.conv_general_dilated(
            x, w_oihw, window_strides=(1, 1), padding=pad,
            dimension_numbers=("NCHW", "OIHW", "NCHW"))
        return y + b.reshape(1, -1, 1, 1)

    w1_o = jnp.transpose(w1, (1, 0))[:, :, None, None]     # (Cm, Cin, 1, 1)
    w2_o = jnp.transpose(w2, (2, 1, 0))[:, :, :, None]     # (Cm, Cm, 3, 1)
    w3_o = jnp.transpose(w3, (2, 1, 0))[:, :, None, :]     # (Cm, Cm, 1, 3)
    w4_o = jnp.transpose(w4, (1, 0))[:, :, None, None]     # (Cout, Cm, 1, 1)

    y = jax.nn.relu(conv(x_nchw, w1_o, b1[0], [(0, 0), (0, 0)]))
    y = jax.nn.relu(conv(y, w2_o, b2[0], [(1, 1), (0, 0)]))
    y = jax.nn.relu(conv(y, w3_o, b3[0], [(0, 0), (1, 1)]))
    y = conv(y, w4_o, b4[0], [(0, 0), (0, 0)])
    return y


if __name__ == "__main__":
    key = jax.random.PRNGKey(0)
    kx, kp = jax.random.split(key)

    B, CH_IN, CH_OUT, H, W = 2, 4, 32, 16, 16
    x = jax.random.normal(kx, (B, CH_IN, H, W), jnp.float32)
    params = init_params(kp, CH_IN, CH_OUT)

    out = small_basic_block_pallas(x, params)
    out = jax.block_until_ready(out)

    ref = jax.block_until_ready(reference_lax(x, params))
    assert out.shape == (B, CH_OUT, H, W), out.shape
    # bf16 MXU inputs with f32 accumulation -> loosened tolerance.
    assert jnp.allclose(out, ref, atol=2e-2, rtol=2e-2), \
        float(jnp.max(jnp.abs(out - ref)))

    print("KERNEL_OK")
</pallas_src>

<mosaic_0001>
module attributes {stable_mosaic.version = 11 : i64} {
  func.func @_block_kernel(%arg0: i32, %arg1: memref<4x512xf32, #tpu.memory_space<vmem>>, %arg2: memref<8x52xbf16, #tpu.memory_space<vmem>>, %arg3: memref<32x8xbf16, #tpu.memory_space<vmem>>, %arg4: memref<56x1xf32, #tpu.memory_space<vmem>>, %arg5: memref<4x512xf32, #tpu.memory_space<vmem>>, %arg6: memref<32x512xf32, #tpu.memory_space<vmem>>) attributes {dimension_semantics = [#tpu.dimension_semantics<parallel>], iteration_bounds = array<i64: 1>, scalar_prefetch = 0 : i64, scratch_operands = 0 : i64, tpu.core_type = #tpu.core_type<tc>, window_params = [{transform_indices = @transform_0, window_bounds = array<i64: 4, 512>}, {pipeline_mode = #tpu.pipeline_mode<synchronous>, transform_indices = @transform_1, window_bounds = array<i64: 8, 52>}, {pipeline_mode = #tpu.pipeline_mode<synchronous>, transform_indices = @transform_2, window_bounds = array<i64: 32, 8>}, {pipeline_mode = #tpu.pipeline_mode<synchronous>, transform_indices = @transform_3, window_bounds = array<i64: 56, 1>}, {pipeline_mode = #tpu.pipeline_mode<synchronous>, transform_indices = @transform_4, window_bounds = array<i64: 4, 512>}, {transform_indices = @transform_5, window_bounds = array<i64: 32, 512>}]} {
    %c0 = arith.constant 0 : index
    %c0_0 = arith.constant 0 : index
    %0 = vector.load %arg1[%c0, %c0_0] : memref<4x512xf32, #tpu.memory_space<vmem>>, vector<4x512xf32>
    %1 = arith.truncf %0 : vector<4x512xf32> to vector<4x512xbf16>
    %c0_1 = arith.constant 0 : index
    %c0_2 = arith.constant 0 : index
    %2 = vector.load %arg2[%c0_1, %c0_2] : memref<8x52xbf16, #tpu.memory_space<vmem>>, vector<8x4xbf16>
    %c0_3 = arith.constant 0 : index
    %c4 = arith.constant 4 : index
    %3 = vector.load %arg2[%c0_3, %c4] : memref<8x52xbf16, #tpu.memory_space<vmem>>, vector<8x24xbf16>
    %c0_4 = arith.constant 0 : index
    %c28 = arith.constant 28 : index
    %4 = vector.load %arg2[%c0_4, %c28] : memref<8x52xbf16, #tpu.memory_space<vmem>>, vector<8x24xbf16>
    %c0_5 = arith.constant 0 : index
    %c0_6 = arith.constant 0 : index
    %5 = vector.load %arg4[%c0_5, %c0_6] : memref<56x1xf32, #tpu.memory_space<vmem>>, vector<8x1xf32>
    %c8 = arith.constant 8 : index
    %c0_7 = arith.constant 0 : index
    %6 = vector.load %arg4[%c8, %c0_7] : memref<56x1xf32, #tpu.memory_space<vmem>>, vector<8x1xf32>
    %c16 = arith.constant 16 : index
    %c0_8 = arith.constant 0 : index
    %7 = vector.load %arg4[%c16, %c0_8] : memref<56x1xf32, #tpu.memory_space<vmem>>, vector<8x1xf32>
    %c24 = arith.constant 24 : index
    %c0_9 = arith.constant 0 : index
    %8 = vector.load %arg4[%c24, %c0_9] : memref<56x1xf32, #tpu.memory_space<vmem>>, vector<32x1xf32>
    %c0_10 = arith.constant 0 : index
    %c0_11 = arith.constant 0 : index
    %9 = vector.load %arg5[%c0_10, %c0_11] : memref<4x512xf32, #tpu.memory_space<vmem>>, vector<1x512xf32>
    %c1 = arith.constant 1 : index
    %c0_12 = arith.constant 0 : index
    %10 = vector.load %arg5[%c1, %c0_12] : memref<4x512xf32, #tpu.memory_space<vmem>>, vector<1x512xf32>
    %c2 = arith.constant 2 : index
    %c0_13 = arith.constant 0 : index
    %11 = vector.load %arg5[%c2, %c0_13] : memref<4x512xf32, #tpu.memory_space<vmem>>, vector<1x512xf32>
    %c3 = arith.constant 3 : index
    %c0_14 = arith.constant 0 : index
    %12 = vector.load %arg5[%c3, %c0_14] : memref<4x512xf32, #tpu.memory_space<vmem>>, vector<1x512xf32>
    %cst = arith.constant dense<0.000000e+00> : vector<8x512xf32>
    %13 = tpu.matmul %2, %1, %cst {dimension_numbers = #tpu.dot_dimension_numbers<[1], [0], [0], [1], [0, 0, 1, 1], [], []>} : vector<8x4xbf16>, vector<4x512xbf16>, vector<8x512xf32> -> vector<8x512xf32>
    %14 = vector.broadcast %5 : vector<8x1xf32> to vector<8x512xf32>
    %15 = arith.addf %13, %14 : vector<8x512xf32>
    %cst_15 = arith.constant 0.000000e+00 : f32
    %16 = vector.broadcast %cst_15 : f32 to vector<8x512xf32>
    %17 = arith.maximumf %15, %16 : vector<8x512xf32>
    %c16_i32 = arith.constant 16 : i32
    %18 = tpu.dynamic_rotate %17 by %c16_i32 dim 1 : vector<8x512xf32>, i32 -> vector<8x512xf32>
    %19 = vector.broadcast %9 : vector<1x512xf32> to vector<8x512xf32>
    %20 = arith.mulf %19, %18 : vector<8x512xf32>
    %c496_i32 = arith.constant 496 : i32
    %21 = tpu.dynamic_rotate %17 by %c496_i32 dim 1 : vector<8x512xf32>, i32 -> vector<8x512xf32>
    %22 = vector.broadcast %10 : vector<1x512xf32> to vector<8x512xf32>
    %23 = arith.mulf %22, %21 : vector<8x512xf32>
    %24 = tpu.concatenate %20, %17, %23 in 0 : vector<8x512xf32>, vector<8x512xf32>, vector<8x512xf32> -> vector<24x512xf32>
    %25 = arith.truncf %24 : vector<24x512xf32> to vector<24x512xbf16>
    %cst_16 = arith.constant dense<0.000000e+00> : vector<8x512xf32>
    %26 = tpu.matmul %3, %25, %cst_16 {dimension_numbers = #tpu.dot_dimension_numbers<[1], [0], [0], [1], [0, 0, 1, 1], [], []>} : vector<8x24xbf16>, vector<24x512xbf16>, vector<8x512xf32> -> vector<8x512xf32>
    %27 = vector.broadcast %6 : vector<8x1xf32> to vector<8x512xf32>
    %28 = arith.addf %26, %27 : vector<8x512xf32>
    %cst_17 = arith.constant 0.000000e+00 : f32
    %29 = vector.broadcast %cst_17 : f32 to vector<8x512xf32>
    %30 = arith.maximumf %28, %29 : vector<8x512xf32>
    %c1_i32 = arith.constant 1 : i32
    %31 = tpu.dynamic_rotate %30 by %c1_i32 dim 1 : vector<8x512xf32>, i32 -> vector<8x512xf32>
    %32 = vector.broadcast %11 : vector<1x512xf32> to vector<8x512xf32>
    %33 = arith.mulf %32, %31 : vector<8x512xf32>
    %c511_i32 = arith.constant 511 : i32
    %34 = tpu.dynamic_rotate %30 by %c511_i32 dim 1 : vector<8x512xf32>, i32 -> vector<8x512xf32>
    %35 = vector.broadcast %12 : vector<1x512xf32> to vector<8x512xf32>
    %36 = arith.mulf %35, %34 : vector<8x512xf32>
    %37 = tpu.concatenate %33, %30, %36 in 0 : vector<8x512xf32>, vector<8x512xf32>, vector<8x512xf32> -> vector<24x512xf32>
    %38 = arith.truncf %37 : vector<24x512xf32> to vector<24x512xbf16>
    %cst_18 = arith.constant dense<0.000000e+00> : vector<8x512xf32>
    %39 = tpu.matmul %4, %38, %cst_18 {dimension_numbers = #tpu.dot_dimension_numbers<[1], [0], [0], [1], [0, 0, 1, 1], [], []>} : vector<8x24xbf16>, vector<24x512xbf16>, vector<8x512xf32> -> vector<8x512xf32>
    %40 = vector.broadcast %7 : vector<8x1xf32> to vector<8x512xf32>
    %41 = arith.addf %39, %40 : vector<8x512xf32>
    %cst_19 = arith.constant 0.000000e+00 : f32
    %42 = vector.broadcast %cst_19 : f32 to vector<8x512xf32>
    %43 = arith.maximumf %41, %42 : vector<8x512xf32>
    %44 = arith.truncf %43 : vector<8x512xf32> to vector<8x512xbf16>
    %c0_20 = arith.constant 0 : index
    %c0_21 = arith.constant 0 : index
    %45 = vector.load %arg3[%c0_20, %c0_21] : memref<32x8xbf16, #tpu.memory_space<vmem>>, vector<32x8xbf16>
    %cst_22 = arith.constant dense<0.000000e+00> : vector<32x512xf32>
    %46 = tpu.matmul %45, %44, %cst_22 {dimension_numbers = #tpu.dot_dimension_numbers<[1], [0], [0], [1], [0, 0, 1, 1], [], []>} : vector<32x8xbf16>, vector<8x512xbf16>, vector<32x512xf32> -> vector<32x512xf32>
    %47 = vector.broadcast %8 : vector<32x1xf32> to vector<32x512xf32>
    %48 = arith.addf %46, %47 : vector<32x512xf32>
    %c0_23 = arith.constant 0 : index
    %c0_24 = arith.constant 0 : index
    %49 = vector.load %arg6[%c0_23, %c0_24] : memref<32x512xf32, #tpu.memory_space<vmem>>, vector<32x512xf32>
    tpu.vector_store %arg6[%c0_23, %c0_24], %48 {strides = array<i32>} : memref<32x512xf32, #tpu.memory_space<vmem>>, vector<32x512xf32>,
    return
  }
  func.func @transform_0(%arg0: i32) -> (i32, i32) {
    %c0_i32 = arith.constant 0 : i32
    %c0_i32_0 = arith.constant 0 : i32
    return %c0_i32, %arg0 : i32, i32
  }
  func.func @transform_1(%arg0: i32) -> (i32, i32) {
    %c0_i32 = arith.constant 0 : i32
    %c0_i32_0 = arith.constant 0 : i32
    %c0_i32_1 = arith.constant 0 : i32
    return %c0_i32, %c0_i32_0 : i32, i32
  }
  func.func @transform_2(%arg0: i32) -> (i32, i32) {
    %c0_i32 = arith.constant 0 : i32
    %c0_i32_0 = arith.constant 0 : i32
    %c0_i32_1 = arith.constant 0 : i32
    return %c0_i32, %c0_i32_0 : i32, i32
  }
  func.func @transform_3(%arg0: i32) -> (i32, i32) {
    %c0_i32 = arith.constant 0 : i32
    %c0_i32_0 = arith.constant 0 : i32
    %c0_i32_1 = arith.constant 0 : i32
    return %c0_i32, %c0_i32_0 : i32, i32
  }
  func.func @transform_4(%arg0: i32) -> (i32, i32) {
    %c0_i32 = arith.constant 0 : i32
    %c0_i32_0 = arith.constant 0 : i32
    %c0_i32_1 = arith.constant 0 : i32
    return %c0_i32, %c0_i32_0 : i32, i32
  }
  func.func @transform_5(%arg0: i32) -> (i32, i32) {
    %c0_i32 = arith.constant 0 : i32
    %c0_i32_0 = arith.constant 0 : i32
    return %c0_i32, %arg0 : i32, i32
  }
}

</mosaic_0001>

<bundles_post_ra>
// kernel: tpu_custom_call.1
= control target key start
LH: loop header
LB: loop body
LE: loop exit
PB: predicated region body
PF: predicated region fallthrough
CT: control target
= control target key end

     0   :  { %vm58_vm0 = vcmask 1041408   ;;  %v808_v6 = vmov 0   ;;  %s1016_s0 = inlined_call_operand.vmem [shape: f32[4,512], index: 0, kind: input, shape index: {}]   ;;  %s1017_s1 = inlined_call_operand.vmem [shape: bf16[8,52], index: 1, kind: input, shape index: {}]   ;;  %s1018_s2 = inlined_call_operand.vmem [shape: bf16[32,8], index: 2, kind: input, shape index: {}]   ;;  %s1019_s3 = inlined_call_operand.vmem [shape: f32[56,1], index: 3, kind: input, shape index: {}]   ;;  %s1020_s4 = inlined_call_operand.vmem [shape: f32[4,512], index: 4, kind: input, shape index: {}]   ;;  %s1021_s5 = inlined_call_operand.hbm [shape: f32[32,512], index: 5, kind: output, shape index: {}]  }
   0x1   :  { %v22_v0 = vld [vmem:[%s1016_s0] sm:$0xff]  ;;  %v23_v1 = vld [vmem:[%s1016_s0 + $0x8] sm:$0xff]  ;;  %103 = vmatprep.mubr.bf16.mxu0 %v808_v6  ;;  %144 = vmatprep.mubr.bf16.mxu1 %v808_v6 }
   0x2   :  { %v26_v2 = vcombine.high %v22_v0, %v22_v0  ;;  %v27_v3 = vcombine.high %v23_v1, %v23_v1  ;;  %v30_v4 = vpack.c.bf16 %v22_v0, %v22_v0  ;;  %v32_v5 = vpack.c.bf16 %v23_v1, %v23_v1  ;;  %v35_v7 = vld [vmem:[%s1019_s3] sm:$0xff]  ;;  %777 = vset.pattern.permute.xlu0 %v808_v6 }
   0x3   :  { %51 = vperm.xlu0 %777, %v35_v7   ;;  %778 = vset.pattern.permute.xlu1 %v808_v6 }
   0x4   :  { %v31_v8 = vpack.c.bf16 %v26_v2, %v26_v2  ;;  %v33_v9 = vpack.c.bf16 %v27_v3, %v27_v3  ;;  %v60_v10 = vsel %vm58_vm0, %v30_v4, 0  ;;  %v66_v11 = vsel %vm58_vm0, %v32_v5, 0 }
   0x5   :  { %10 = vsyncpa [#allocation3], 0  ;;  %v34_v12 = vld [vmem:[%s1017_s1] sm:$0xf]  ;;  %vm54_vm1 = vcmask 31744   ;;  %s809_s1 = smov 16   ;;  %v165_v32 = vlaneseq }
   0x6   :  { %746 = vmatprep.subr.msk.bf16.mxu0 %vm58_vm0, %v31_v8  ;;  %748 = vmatprep.subr.msk.bf16.mxu1 %vm58_vm0, %v33_v9  ;;  %s810_s25 = smov 112   ;;  %v878_v30 = vcombine.low %v34_v12, %v34_v12  ;;  %v36_v31 = vld [vmem:[%s1019_s3 + $0x8] sm:$0xff]  ;;  %s811_s28 = smov 124   ;;  %vm257_vm4 = vcmask 1043456   ;;  %vm253_vm5 = vcmask 195584   ;;  %vm586_vm8 = vcmask 64512  }
   0x7   :  { %72 = vmatpush1.bf16.msra.mxu0 %v60_v10  ;;  %113 = vmatpush1.bf16.msra.mxu1 %v66_v11  ;;  %v174_v33 = vshrl.u32 %v165_v32, 7  ;;  %v884_v34 = vand.u32 127, %v165_v32  ;;  %v42_v36 = vld [vmem:[%s1020_s4] ss:$4 sm:$0xf]  ;;  %s812_s8 = smov 1  }
   0x8   :  { %v743_v43 = vld [vmem:[%s1020_s4 + $0x1] ss:$4 sm:$0xf]  ;;  %s813_s9 = smov 127   ;;  %s814_s12 = smov 100  }
   0x9   :  { %v886_v35 = vsub.s32 3, %v174_v33  ;;  %v891_v39 = vsub.s32 0, %v174_v33  ;;  %v893_v40 = vsub.s32 1, %v174_v33  ;;  %vm167_vm2 = vcmp.lt.s32.totalorder %v884_v34, 16 }
   0xa   :  { %747 = vmatmul.mubr.msk.bf16.vlgmr.msra.gmra.mrb[0].mxu0 %vm54_vm1, %v34_v12  ;;  %749 = vmatmul.mubr.msk.bf16.vlgmr.msra.gmra.mrb[0].mxu1 %vm54_vm1, %v34_v12  ;;  %v897_v42 = vsub.s32 2, %v174_v33  ;;  %vm205_vm3 = vcmp.lt.s32.totalorder %v884_v34, 112  ;;  %vm364_vm6 = vcmp.lt.s32.totalorder %v884_v34, 1  ;;  %vm402_vm7 = vcmp.lt.s32.totalorder %v884_v34, 127  ;;  %v38_v34 = vld [vmem:[%s1019_s3 + $0x18] sm:$0xff] }
   0xb   :  { %302 = vmatprep.mubr.bf16.mxu0 %v808_v6  ;;  %343 = vmatprep.mubr.bf16.mxu1 %v808_v6  ;;  %v188_v41 = vrot.slane %v42_v36, %v886_v35  ;;  %v176_v45 = vrot.slane %v42_v36, %v891_v39  ;;  %v180_v49 = vrot.slane %v42_v36, %v893_v40 }
   0xc   :  { %v184_v51 = vrot.slane %v42_v36, %v897_v42  ;;  %v214_v52 = vrot.slane %v743_v43, %v891_v39  ;;  %v218_v57 = vrot.slane %v743_v43, %v893_v40  ;;  %v222_v61 = vrot.slane %v743_v43, %v897_v42 }
   0xd   :  { %v226_v1 = vrot.slane %v743_v43, %v886_v35 }
  0x82   :  { %v52_v13 = vpop.permute.xlu0 %51 }
  0xdd   :  { %v105_v14 = vpop.f32.mrb[0].mxu0  ;;  %v146_v15 = vpop.f32.mrb[0].mxu1 }
  0xde   :  { %v106_v16 = vadd.f32 %v105_v14, %v52_v13  ;;  %v147_v17 = vadd.f32 %v146_v15, %v52_v13  ;;  %v107_v18 = vpop.f32.mrb[1].mxu0  ;;  %v148_v19 = vpop.f32.mrb[1].mxu1 }
  0xdf   :  { %v150_v20 = vpop.f32.mrb[2].mxu1  ;;  %v109_v21 = vpop.f32.mrb[2].mxu0  ;;  %v149_v24 = vadd.f32 %v148_v19, %v52_v13  ;;  %v108_v27 = vadd.f32 %v107_v18, %v52_v13 }
  0xe0   :  { %v870_v22 = vmax.f32 %v106_v16, 0.0  ;;  %v872_v23 = vmax.f32 %v147_v17, 0.0  ;;  %v151_v25 = vpop.f32.mrb[3].mxu1  ;;  %v110_v26 = vpop.f32.mrb[3].mxu0 }
  0xe1   :  { %v156_v28 = vmax.f32 %v149_v24, 0.0  ;;  %v154_v29 = vmax.f32 %v108_v27, 0.0 }
  0xe2   :  { %161 = vrot.lane.b32.xlu1 %v872_v23, %s809_s1  ;;  %157 = vrot.lane.b32.xlu0 %v870_v22, %s809_s1 }
  0xe6   :  { %197 = vrot.lane.b32.xlu1 %v870_v22, %s810_s25  ;;  %163 = vrot.lane.b32.xlu0 %v156_v28, %s809_s1 }
  0xea   :  { %159 = vrot.lane.b32.xlu1 %v154_v29, %s809_s1  ;;  %199 = vrot.lane.b32.xlu0 %v154_v29, %s810_s25 }
  0xee   :  { %201 = vrot.lane.b32.xlu1 %v872_v23, %s810_s25  ;;  %203 = vrot.lane.b32.xlu0 %v156_v28, %s810_s25 }
  0xf2   :  { %245 = vperm.xlu0 %777, %v36_v31   ;;  %251 = vrot.lane.b32.xlu1 %v878_v30, %s811_s28 }
 0x154   :  { %v162_v37 = vpop.permute.xlu1 %161  ;;  %v158_v38 = vpop.permute.xlu0 %157 }
 0x158   :  { %v198_v44 = vpop.permute.xlu1 %197  ;;  %v164_v46 = vpop.permute.xlu0 %163 }
 0x159   :  { %v168_v47 = vsel %vm167_vm2, %v162_v37, %v164_v46  ;;  %v171_v48 = vsel %vm167_vm2, %v164_v46, %v158_v38  ;;  %v41_v46 = vld [vmem:[%s1019_s3 + $0x30] sm:$0xff] }
 0x15a   :  { %v196_v50 = vmul.f32 %v188_v41, %v168_v47  ;;  %v193_v53 = vmul.f32 %v176_v45, %v171_v48  ;;  %v39_v45 = vld [vmem:[%s1019_s3 + $0x20] sm:$0xff] }
 0x15b   :  { %v744_v47 = vld [vmem:[%s1020_s4 + $0x2] ss:$4 sm:$0xf] }
 0x15c   :  { %v160_v54 = vpop.permute.xlu1 %159  ;;  %v200_v55 = vpop.permute.xlu0 %199  ;;  %v238_v56 = vpack.c.bf16 %v156_v28, %v196_v50  ;;  %v235_v2 = vpack.c.bf16 %v870_v22, %v193_v53  ;;  %v377_v48 = vrot.slane %v744_v47, %v893_v40  ;;  %v373_v53 = vrot.slane %v744_v47, %v891_v39 }
 0x15d   :  { %v169_v58 = vsel %vm167_vm2, %v160_v54, %v162_v37  ;;  %v170_v59 = vsel %vm167_vm2, %v158_v38, %v160_v54  ;;  %v208_v60 = vsel %vm205_vm3, %v198_v44, %v200_v55  ;;  %v385_v54 = vrot.slane %v744_v47, %v886_v35 }
 0x15e   :  { %v194_v62 = vmul.f32 %v180_v49, %v170_v59  ;;  %v195_v63 = vmul.f32 %v184_v51, %v169_v58  ;;  %v231_v0 = vmul.f32 %v214_v52, %v208_v60  ;;  %311 = vmatprep.subr.bf16.mxu1 %v238_v56  ;;  %v381_v51 = vrot.slane %v744_v47, %v897_v42  ;;  %v745_v56 = vld [vmem:[%s1020_s4 + $0x3] ss:$4 sm:$0xf] }
 0x160   :  { %v237_v3 = vpack.c.bf16 %v872_v23, %v195_v63  ;;  %v202_v4 = vpop.permute.xlu1 %201  ;;  %v204_v5 = vpop.permute.xlu0 %203  ;;  %v236_v7 = vpack.c.bf16 %v154_v29, %v194_v62  ;;  %v239_v8 = vpack.c.bf16 %v231_v0, %v231_v0 }
 0x161   :  { %v207_v9 = vsel %vm205_vm3, %v200_v55, %v202_v4  ;;  %v206_v10 = vsel %vm205_vm3, %v202_v4, %v204_v5  ;;  %v209_v11 = vsel %vm205_vm3, %v204_v5, %v198_v44  ;;  %v37_v44 = vld [vmem:[%s1019_s3 + $0x10] sm:$0xff] }
 0x162   :  { %v232_v12 = vmul.f32 %v218_v57, %v207_v9  ;;  %v233_v13 = vmul.f32 %v222_v61, %v206_v10  ;;  %v234_v14 = vmul.f32 %v226_v1, %v209_v11  ;;  %270 = vmatprep.subr.bf16.mxu0 %v236_v7  ;;  %312 = vmatpush1.bf16.msra.mxu1 %v237_v3  ;;  %v259_v18 = vsel %vm257_vm4, %v239_v8, 0 }
 0x163   :  { %271 = vmatpush1.bf16.msra.mxu0 %v235_v2  ;;  %v411_v1 = vrot.slane %v745_v56, %v891_v39  ;;  %v415_v9 = vrot.slane %v745_v56, %v893_v40  ;;  %v419_v11 = vrot.slane %v745_v56, %v897_v42 }
 0x164   :  { %v240_v15 = vpack.c.bf16 %v232_v12, %v232_v12  ;;  %v241_v16 = vpack.c.bf16 %v233_v13, %v233_v13  ;;  %v242_v17 = vpack.c.bf16 %v234_v14, %v234_v14  ;;  %v252_v20 = vpop.permute.xlu1 %251  ;;  %v423_v12 = vrot.slane %v745_v56, %v886_v35 }
 0x166   :  { %751 = vmatprep.subr.msk.bf16.mxu0 %vm257_vm4, %v240_v15  ;;  %753 = vmatprep.subr.msk.bf16.mxu1 %vm257_vm4, %v242_v17  ;;  %v265_v19 = vsel %vm257_vm4, %v241_v16, 0 }
 0x167   :  { %273 = vmatpush1.bf16.msra.mxu0 %v259_v18  ;;  %314 = vmatpush1.bf16.msra.mxu1 %v265_v19 }
 0x16a   :  { %752 = vmatmul.mubr.msk.bf16.vlgmr.msra.gmra.mrb[4].mxu0 %vm253_vm5, %v252_v20  ;;  %754 = vmatmul.mubr.msk.bf16.vlgmr.msra.gmra.mrb[4].mxu1 %vm253_vm5, %v252_v20 }
 0x16b   :  { %494 = vmatprep.mubr.bf16.mxu0 %v808_v6  ;;  %535 = vmatprep.mubr.bf16.mxu1 %v808_v6 }
 0x171   :  { %v246_v21 = vpop.permute.xlu0 %245 }
 0x23d   :  { %v304_v22 = vpop.f32.mrb[4].mxu0  ;;  %v345_v23 = vpop.f32.mrb[4].mxu1 }
 0x23e   :  { %v305_v24 = vadd.f32 %v304_v22, %v246_v21  ;;  %v306_v25 = vpop.f32.mrb[5].mxu0  ;;  %v347_v26 = vpop.f32.mrb[5].mxu1  ;;  %v346_v32 = vadd.f32 %v345_v23, %v246_v21 }
 0x23f   :  { %v307_v27 = vadd.f32 %v306_v25, %v246_v21  ;;  %v308_v28 = vpop.f32.mrb[6].mxu0  ;;  %v349_v29 = vpop.f32.mrb[6].mxu1  ;;  %v348_v38 = vadd.f32 %v347_v26, %v246_v21 }
 0x240   :  { %v352_v31 = vmax.f32 %v305_v24, 0.0  ;;  %v309_v33 = vpop.f32.mrb[7].mxu0  ;;  %v350_v36 = vpop.f32.mrb[7].mxu1  ;;  %v354_v41 = vmax.f32 %v346_v32, 0.0  ;;  %v40_v24 = vld [vmem:[%s1019_s3 + $0x28] sm:$0xff] }
 0x241   :  { %v353_v37 = vmax.f32 %v307_v27, 0.0  ;;  %v355_v43 = vmax.f32 %v348_v38, 0.0 }
 0x242   :  { %356 = vrot.lane.b32.xlu1 %v352_v31, %s812_s8 }
 0x243   :  { %358 = vrot.lane.b32.xlu0 %v353_v37, %s812_s8 }
 0x246   :  { %360 = vrot.lane.b32.xlu1 %v354_v41, %s812_s8 }
 0x247   :  { %362 = vrot.lane.b32.xlu0 %v355_v43, %s812_s8 }
 0x24a   :  { %394 = vrot.lane.b32.xlu1 %v352_v31, %s813_s9 }
 0x24b   :  { %396 = vrot.lane.b32.xlu0 %v353_v37, %s813_s9 }
 0x24e   :  { %398 = vrot.lane.b32.xlu1 %v354_v41, %s813_s9 }
 0x24f   :  { %400 = vrot.lane.b32.xlu0 %v355_v43, %s813_s9 }
 0x252   :  { %445 = vrot.lane.b32.xlu1 %v878_v30, %s814_s12 }
 0x253   :  { %442 = vperm.xlu0 %777, %v37_v44  }
 0x256   :  { %558 = vperm.xlu1 %778, %v38_v34  }
 0x257   :  { %563 = vperm.xlu0 %777, %v39_v45  }
 0x25a   :  { %568 = vperm.xlu1 %778, %v40_v24  }
 0x25b   :  { %573 = vperm.xlu0 %777, %v41_v46  }
 0x2b4   :  { %v357_v30 = vpop.permute.xlu1 %356 }
 0x2b5   :  { %v359_v49 = vpop.permute.xlu0 %358 }
 0x2b6   :  { %v367_v50 = vsel %vm364_vm6, %v357_v30, %v359_v49 }
 0x2b7   :  { %v391_v52 = vmul.f32 %v377_v48, %v367_v50 }
 0x2b8   :  { %v361_v55 = vpop.permute.xlu1 %360 }
 0x2b9   :  { %v366_v57 = vsel %vm364_vm6, %v359_v49, %v361_v55  ;;  %v363_v58 = vpop.permute.xlu0 %362  ;;  %v433_v59 = vpack.c.bf16 %v353_v37, %v391_v52 }
 0x2ba   :  { %v392_v60 = vmul.f32 %v381_v51, %v366_v57  ;;  %v365_v61 = vsel %vm364_vm6, %v361_v55, %v363_v58  ;;  %v368_v62 = vsel %vm364_vm6, %v363_v58, %v357_v30 }
 0x2bb   :  { %v390_v63 = vmul.f32 %v373_v53, %v368_v62  ;;  %v393_v0 = vmul.f32 %v385_v54, %v365_v61  ;;  %462 = vmatprep.subr.bf16.mxu0 %v433_v59  ;;  %v782_v53 = vld [vmem:[%s1018_s2] sm:$0xff]   ;;  %v783_v54 = vld [vmem:[%s1018_s2 + $0x8] sm:$0xff]   ;;  %s815_s2 = smov [#allocation2]  }
 0x2bc   :  { %v395_v2 = vpop.permute.xlu1 %394  ;;  %v434_v7 = vpack.c.bf16 %v354_v41, %v392_v60  ;;  %s732_s25 = sshll.u32 %s815_s2, 4  ;;  %s733_s25 = int_to_ptr.vmem [resolvable:$true] %s732_s25 }
 0x2bd   :  { %v432_v3 = vpack.c.bf16 %v352_v31, %v390_v63  ;;  %v397_v4 = vpop.permute.xlu0 %396  ;;  %v435_v5 = vpack.c.bf16 %v355_v43, %v393_v0  ;;  %s784_s26 = scalar_lea.vmem %s733_s25, 2048  ;;  %p789_p1 = scmp.lt.s32.totalorder %s733_s25, %s733_s25 }
 0x2be   :  { %v405_v8 = vsel %vm402_vm7, %v395_v2, %v397_v4  ;;  %p785_p0 = scmp.ne.s32.totalorder %s733_s25, %s784_s26  ;;  %p790_p2 = scmp.lt.s32.totalorder %s784_s26, %s784_s26 }
 0x2bf   :  { %v428_v10 = vmul.f32 %v411_v1, %v405_v8  ;;  %463 = vmatpush1.bf16.msra.mxu0 %v432_v3  ;;  %503 = vmatprep.subr.bf16.mxu1 %v435_v5 }
 0x2c0   :  { %504 = vmatpush1.bf16.msra.mxu1 %v434_v7  ;;  %v399_v13 = vpop.permute.xlu1 %398  ;;  %p791_p3 = por %p790_p2, %p789_p1 }
 0x2c1   :  { %v404_v39 = vsel %vm402_vm7, %v397_v4, %v399_v13  ;;  %v401_v14 = vpop.permute.xlu0 %400  ;;  %v436_v15 = vpack.c.bf16 %v428_v10, %v428_v10 }
 0x2c2   :  { %v429_v16 = vmul.f32 %v415_v9, %v404_v39  ;;  %v403_v17 = vsel %vm402_vm7, %v399_v13, %v401_v14  ;;  %v406_v40 = vsel %vm402_vm7, %v401_v14, %v395_v2  ;;  %p792_p4 = pnand %p791_p3, %p785_p0 }
 0x2c3   :  { %v430_v18 = vmul.f32 %v419_v11, %v403_v17  ;;  %v431_v19 = vmul.f32 %v423_v12, %v406_v40  ;;  %v451_v35 = vsel %vm257_vm4, %v436_v15, 0 }
 0x2c4   :  { %v437_v20 = vpack.c.bf16 %v429_v16, %v429_v16  ;;  %v446_v23 = vpop.permute.xlu1 %445 }
 0x2c5   :  { %v438_v42 = vpack.c.bf16 %v430_v18, %v430_v18  ;;  %v439_v21 = vpack.c.bf16 %v431_v19, %v431_v19 }
 0x2c6   :  { %755 = vmatprep.subr.msk.bf16.mxu0 %vm257_vm4, %v437_v20 }
 0x2c7   :  { %465 = vmatpush1.bf16.msra.mxu0 %v451_v35  ;;  %757 = vmatprep.subr.msk.bf16.mxu1 %vm257_vm4, %v439_v21  ;;  %v457_v22 = vsel %vm257_vm4, %v438_v42, 0 }
 0x2c8   :  { %506 = vmatpush1.bf16.msra.mxu1 %v457_v22 }
 0x2ca   :  { %756 = vmatmul.mubr.msk.bf16.vlgmr.msra.gmra.mrb[8].mxu0 %vm253_vm5, %v446_v23 }
 0x2cb   :  { %758 = vmatmul.mubr.msk.bf16.vlgmr.msra.gmra.mrb[8].mxu1 %vm253_vm5, %v446_v23  ;;  %637 = vmatprep.mubr.bf16.mxu0 %v808_v6 }
 0x2cc   :  { %690 = vmatprep.mubr.bf16.mxu1 %v808_v6 }
 0x2d2   :  { %v443_v25 = vpop.permute.xlu0 %442 }
 0x2d5   :  { %v559_v55 = vpop.permute.xlu1 %558 }
 0x2d6   :  { %v564_v56 = vpop.permute.xlu0 %563 }
 0x2d9   :  { %v569_v9 = vpop.permute.xlu1 %568 }
 0x2da   :  { %v574_v10 = vpop.permute.xlu0 %573 }
 0x39d   :  { %v496_v26 = vpop.f32.mrb[8].mxu0 }
 0x39e   :  { %v497_v27 = vadd.f32 %v496_v26, %v443_v25  ;;  %v498_v28 = vpop.f32.mrb[9].mxu0  ;;  %v537_v29 = vpop.f32.mrb[8].mxu1 }
 0x39f   :  { %v499_v31 = vadd.f32 %v498_v28, %v443_v25  ;;  %v538_v32 = vadd.f32 %v537_v29, %v443_v25  ;;  %v500_v33 = vpop.f32.mrb[10].mxu0  ;;  %v539_v36 = vpop.f32.mrb[9].mxu1 }
 0x3a0   :  { %v544_v37 = vmax.f32 %v497_v27, 0.0  ;;  %v540_v38 = vadd.f32 %v539_v36, %v443_v25  ;;  %v501_v41 = vpop.f32.mrb[11].mxu0  ;;  %v541_v43 = vpop.f32.mrb[10].mxu1 }
 0x3a1   :  { %v545_v44 = vmax.f32 %v499_v31, 0.0  ;;  %v546_v45 = vmax.f32 %v538_v32, 0.0  ;;  %v542_v46 = vpop.f32.mrb[11].mxu1 }
 0x3a2   :  { %v548_v47 = vpack.c.bf16 %v544_v37, %v544_v37  ;;  %v547_v48 = vmax.f32 %v540_v38, 0.0 }
 0x3a3   :  { %v549_v30 = vpack.c.bf16 %v545_v44, %v545_v44  ;;  %v550_v49 = vpack.c.bf16 %v546_v45, %v546_v45 }
 0x3a4   :  { %v551_v50 = vpack.c.bf16 %v547_v48, %v547_v48  ;;  %v594_v51 = vsel %vm257_vm4, %v548_v47, 0 }
 0x3a5   :  { %761 = vmatprep.subr.msk.bf16.mxu0 %vm257_vm4, %v549_v30  ;;  %v600_v52 = vsel %vm257_vm4, %v550_v49, 0 }
 0x3a6   :  { %606 = vmatpush1.bf16.msra.mxu0 %v594_v51  ;;  %764 = vmatprep.subr.msk.bf16.mxu1 %vm257_vm4, %v551_v50 }
 0x3a7   :  { %659 = vmatpush1.bf16.msra.mxu1 %v600_v52 }
 0x3a9   :  { %762 = vmatmul.mubr.msk.bf16.vlgmr.msra.gmra.mrb[12].mxu0 %vm586_vm8, %v782_v53 }
 0x3aa   :  { %765 = vmatmul.mubr.msk.bf16.vlgmr.msra.gmra.mrb[12].mxu1 %vm586_vm8, %v782_v53  ;;  %647 = vmatprep.mubr.bf16.mxu0 %v808_v6 }
 0x3ab   :  { %700 = vmatprep.mubr.bf16.mxu1 %v808_v6 }
 0x3b1   :  { %763 = vmatmul.mubr.msk.bf16.gmra.mrb[16].mxu0 %vm586_vm8, %v783_v54 }
 0x3b2   :  { %766 = vmatmul.mubr.msk.bf16.gmra.mrb[16].mxu1 %vm586_vm8, %v783_v54 }
 0x47c   :  { %v639_v57 = vpop.f32.mrb[12].mxu0 }
 0x47d   :  { %v641_v58 = vpop.f32.mrb[13].mxu0  ;;  %v692_v59 = vpop.f32.mrb[12].mxu1  ;;  %v640_v60 = vadd.f32 %v639_v57, %v559_v55 }
 0x47e   :  { %v643_v61 = vpop.f32.mrb[14].mxu0  ;;  %v694_v62 = vpop.f32.mrb[13].mxu1  ;;  %v642_v63 = vadd.f32 %v641_v58, %v559_v55  ;;  %v693_v0 = vadd.f32 %v692_v59, %v559_v55 }
 0x47f   :  { %v644_v1 = vadd.f32 %v643_v61, %v564_v56  ;;  %v645_v2 = vpop.f32.mrb[15].mxu0  ;;  %v696_v3 = vpop.f32.mrb[14].mxu1  ;;  %v695_v6 = vadd.f32 %v694_v62, %v559_v55  ;;  %711 = vst [vmem:[#allocation2] sm:$0xff] %v640_v60 }
 0x480   :  { %v646_v4 = vadd.f32 %v645_v2, %v564_v56  ;;  %v697_v5 = vadd.f32 %v696_v3, %v564_v56  ;;  %v698_v7 = vpop.f32.mrb[15].mxu1  ;;  %712 = vst [vmem:[#allocation2 + $0x8] sm:$0xff] %v642_v63  ;;  %713 = vst [vmem:[#allocation2 + $0x10] sm:$0xff] %v693_v0 }
 0x481   :  { %715 = vst [vmem:[#allocation2 + $0x20] sm:$0xff] %v644_v1  ;;  %v699_v8 = vadd.f32 %v698_v7, %v564_v56  ;;  %714 = vst [vmem:[#allocation2 + $0x18] sm:$0xff] %v695_v6 }
 0x482   :  { %716 = vst [vmem:[#allocation2 + $0x28] sm:$0xff] %v646_v4  ;;  %717 = vst [vmem:[#allocation2 + $0x30] sm:$0xff] %v697_v5 }
 0x483   :  { %718 = vst [vmem:[#allocation2 + $0x38] sm:$0xff] %v699_v8 }
 0x484   :  { %v649_v11 = vpop.f32.mrb[16].mxu0 }
 0x485   :  { %v651_v12 = vpop.f32.mrb[17].mxu0  ;;  %v702_v13 = vpop.f32.mrb[16].mxu1  ;;  %v650_v39 = vadd.f32 %v649_v11, %v569_v9 }
 0x486   :  { %v653_v14 = vpop.f32.mrb[18].mxu0  ;;  %v704_v15 = vpop.f32.mrb[17].mxu1  ;;  %v652_v16 = vadd.f32 %v651_v12, %v569_v9  ;;  %v703_v17 = vadd.f32 %v702_v13, %v569_v9 }
 0x487   :  { %v654_v40 = vadd.f32 %v653_v14, %v574_v10  ;;  %v655_v18 = vpop.f32.mrb[19].mxu0  ;;  %v706_v19 = vpop.f32.mrb[18].mxu1  ;;  %v705_v20 = vadd.f32 %v704_v15, %v569_v9  ;;  %719 = vst [vmem:[#allocation2 + $0x40] sm:$0xff] %v650_v39 }
 0x488   :  { %v656_v42 = vadd.f32 %v655_v18, %v574_v10  ;;  %v707_v21 = vadd.f32 %v706_v19, %v574_v10  ;;  %v708_v35 = vpop.f32.mrb[19].mxu1  ;;  %720 = vst [vmem:[#allocation2 + $0x48] sm:$0xff] %v652_v16  ;;  %721 = vst [vmem:[#allocation2 + $0x50] sm:$0xff] %v703_v17 }
 0x489   :  { %723 = vst [vmem:[#allocation2 + $0x60] sm:$0xff] %v654_v40  ;;  %v709_v22 = vadd.f32 %v708_v35, %v574_v10  ;;  %722 = vst [vmem:[#allocation2 + $0x58] sm:$0xff] %v705_v20 }
 0x48a   :  { %724 = vst [vmem:[#allocation2 + $0x68] sm:$0xff] %v656_v42  ;;  %725 = vst [vmem:[#allocation2 + $0x70] sm:$0xff] %v707_v21 }
 0x48b   :  { %726 = vst [vmem:[#allocation2 + $0x78] sm:$0xff] %v709_v22 }
 0x48c   :  { %795 = shalt.err (!%p792_p4)
}
 0x48d   :  { %s796_s29 = scalar_lea.hbm %s1021_s5, 2048 }
 0x48e   :  { %p797_p5 = scmp.ne.s32.totalorder %s1021_s5, %s796_s29  ;;  %p800_p6 = scmp.lt.u32.totalorder %s796_s29, %s1021_s5 }
 0x490   :  { %p802_p7 = pnand %p800_p6, %p797_p5 }
 0x492   :  { %805 = shalt.err (!%p802_p7)
}
 0x493   :  { %s816_s9 = smov 512   ;;  %s817_s10 = smov 32  }
 0x494   :  { %738 = dma.vmem_to_hbm [thread:$0]  %s733_s25, 2048, %s1021_s5, [#allocation3], %s816_s9, %s816_s9, %s817_s10  }
 0x495   :  { %806 = dma.done.wait [#allocation3], 2048  }
 0x496   :  { %807 = vsyncadd [#allocation3], 4294965248 }
 0x497   :  { %742 = vsyncpa [#allocation3], 1 }

</bundles_post_ra>
